<compile_context>
chip_gen: v5e
topology: v5e:2x2
jax: 0.10.0
libtpu: 0.0.40
codegen_flags: <defaults>
</compile_context>

<pallas_src>
import functools

import jax
import jax.numpy as jnp
from jax.experimental import pallas as pl
from jax.experimental.pallas import tpu as pltpu


def _se_kernel(x_ref, w1_ref, b1_ref, w2_ref, b2_ref, o_ref, *, inv_hw):
    # x_ref block: (Nb, C, HW) — NCHW layout, HW (spatial) on the lane axis.

    # adaptive_avg_pool2d((1,1)) == spatial mean. f32 accumulation over the
    # lane axis (XLU reduce) without materializing a widened block copy.
    pooled = jnp.sum(x_ref[...], axis=2, dtype=jnp.float32) * inv_hw   # (Nb, C)

    # fc1 (1x1 conv) == batched matmul (Nb,C)@(C,Sq), then exact SiLU.
    h = jnp.dot(pooled, w1_ref[...].astype(jnp.float32),
                preferred_element_type=jnp.float32) + b1_ref[...].astype(jnp.float32)
    h = h * (1.0 / (1.0 + jnp.exp(-h)))                                # SiLU

    # fc2 (1x1 conv) == batched matmul (Nb,Sq)@(Sq,C), then exact Sigmoid.
    s = jnp.dot(h, w2_ref[...].astype(jnp.float32),
                preferred_element_type=jnp.float32) + b2_ref[...].astype(jnp.float32)
    s = 1.0 / (1.0 + jnp.exp(-s))                                      # Sigmoid

    # Per-channel scale broadcast along the lane (spatial) axis; multiply in
    # the input dtype at the store site — no full-block f32 temporary.
    scale = s.astype(x_ref.dtype)[:, :, None]                          # (Nb, C, 1)
    o_ref[...] = (x_ref[...] * scale).astype(o_ref.dtype)


def squeeze_excitation(x_nchw, w1, b1, w2, b2, *, donate_x=False):
    """SE block: x * sigmoid(fc2(silu(fc1(mean_hw(x))))).

    x_nchw: (N, C, H, W); w1: (C, Sq); b1: (1, Sq); w2: (Sq, C); b2: (1, C).
    """
    N, C, H, W = x_nchw.shape
    HW = H * W
    Sq = w1.shape[1]

    # Free, contiguous view: NCHW -> (N, C, HW). No transpose, no extra HBM pass.
    x = x_nchw.reshape(N, C, HW)

    # TODO(synk): when HW % 128 != 0 (EfficientNet stages with HW = 49/196/784/
    # 3136) the lane-dense-store win is forfeited (masked vst.msk); a channel-
    # grouped lane layout (fold g channels so g*HW % 128 == 0, expanding the
    # per-channel scale per group) would restore it.

    # ---- Generation-aware VMEM budget --------------------------------------
    try:
        vmem_cap = int(pltpu.get_tpu_info().vmem_capacity_bytes)
    except Exception:  # conservative fallback (v7x-sized)
        vmem_cap = 64 * 1024 * 1024

    # Resident block buffers: double-buffered input + double-buffered output
    # ~= 4 * nb * per_sample_bytes (the kernel adds no full-block temporaries).
    # Use 5/8 of physical VMEM for blocks: ~80 MiB on v5e/v6e, ~40 MiB on v7x.
    budget = (vmem_cap * 5) // 8
    per_sample_bytes = C * HW * x.dtype.itemsize
    nb = int(max(1, min(N, budget // (4 * per_sample_bytes))))
    # Keep at least 2 grid steps when N >= 2 so both v7x TensorCores get work.
    if N >= 2:
        nb = min(nb, -(-N // 2))
    grid_n = pl.cdiv(N, nb)
    # TODO(synk): for SE layers whose single-sample plane exceeds the VMEM
    # budget, split HW with a two-pass (mean accumulate, then scale) scheme.

    # Explicit scoped-VMEM limit: block buffers + headroom for weights/temps,
    # never above physical capacity.
    vmem_limit = int(min(vmem_cap, 4 * nb * per_sample_bytes + (8 << 20)))

    # Advisory cost: two tiny matmuls + elementwise scale; HBM-bound (r+w of x).
    flops = int(4 * N * C * Sq + N * C * HW)
    transcendentals = int(N * (C + Sq))
    bytes_accessed = int(2 * x.nbytes + w1.nbytes + w2.nbytes + b1.nbytes + b2.nbytes)

    kernel = functools.partial(_se_kernel, inv_hw=1.0 / float(HW))

    out = pl.pallas_call(
        kernel,
        out_shape=jax.ShapeDtypeStruct((N, C, HW), x.dtype),
        grid_spec=pltpu.PrefetchScalarGridSpec(
            num_scalar_prefetch=0,
            grid=(grid_n,),
            in_specs=[
                pl.BlockSpec((nb, C, HW), lambda n: (n, 0, 0)),
                pl.BlockSpec((C, Sq), lambda n: (0, 0)),
                pl.BlockSpec((1, Sq), lambda n: (0, 0)),
                pl.BlockSpec((Sq, C), lambda n: (0, 0)),
                pl.BlockSpec((1, C), lambda n: (0, 0)),
            ],
            out_specs=pl.BlockSpec((nb, C, HW), lambda n: (n, 0, 0)),
        ),
        # Opt-in in-place scale of x (avoids a surprise defensive copy when the
        # caller still needs x).
        input_output_aliases={0: 0} if donate_x else {},
        compiler_params=pltpu.CompilerParams(
            dimension_semantics=("parallel",),
            vmem_limit_bytes=vmem_limit),
        cost_estimate=pl.CostEstimate(
            flops=flops,
            transcendentals=transcendentals,
            bytes_accessed=bytes_accessed),
    )(x, w1, b1, w2, b2)

    # Free view back to NCHW.
    return out.reshape(N, C, H, W)


def _reference(x_nchw, w1, b1, w2, b2):
    pooled = jnp.mean(x_nchw, axis=(2, 3))                      # (N, C)
    h = pooled @ w1 + b1                                        # (N, Sq)
    h = h * jax.nn.sigmoid(h)                                   # SiLU
    s = jax.nn.sigmoid(h @ w2 + b2)                             # (N, C)
    return x_nchw * s[:, :, None, None]


if __name__ == "__main__":
    # Module config: input_c=16, expand_c=32 -> squeeze_c = 16 // 4 = 4
    input_c, expand_c, squeeze_factor = 16, 32, 4
    squeeze_c = input_c // squeeze_factor
    N, H, W = 2, 16, 16     # HW = 256 -> lane-dense (multiple of 128) stores

    key = jax.random.PRNGKey(0)
    kx, k1, kb1, k2, kb2 = jax.random.split(key, 5)

    x = jax.random.normal(kx, (N, expand_c, H, W), dtype=jnp.float32)

    # fc1: Conv2d(expand_c, squeeze_c, 1) -> weight stored transposed as
    # (expand_c, squeeze_c) for right-matmul.
    w1 = jax.random.normal(k1, (expand_c, squeeze_c), dtype=jnp.float32) * 0.1
    b1 = jax.random.normal(kb1, (1, squeeze_c), dtype=jnp.float32) * 0.1
    # fc2: Conv2d(squeeze_c, expand_c, 1) -> (squeeze_c, expand_c).
    w2 = jax.random.normal(k2, (squeeze_c, expand_c), dtype=jnp.float32) * 0.1
    b2 = jax.random.normal(kb2, (1, expand_c), dtype=jnp.float32) * 0.1

    ref = _reference(x, w1, b1[0], w2, b2[0])

    out = squeeze_excitation(x, w1, b1, w2, b2)
    out = jax.block_until_ready(out)

    assert out.shape == x.shape
    # Exact SiLU / Sigmoid in the kernel -> tight tolerance.
    assert jnp.allclose(out, ref, atol=1e-4, rtol=1e-4), "mismatch vs reference"

    print("KERNEL_OK")
</pallas_src>

<mosaic_0001>
module attributes {stable_mosaic.version = 11 : i64} {
  func.func @_se_kernel(%arg0: i32, %arg1: memref<1x32x256xf32, #tpu.memory_space<vmem>>, %arg2: memref<32x4xf32, #tpu.memory_space<vmem>>, %arg3: memref<1x4xf32, #tpu.memory_space<vmem>>, %arg4: memref<4x32xf32, #tpu.memory_space<vmem>>, %arg5: memref<1x32xf32, #tpu.memory_space<vmem>>, %arg6: memref<1x32x256xf32, #tpu.memory_space<vmem>>) attributes {dimension_semantics = [#tpu.dimension_semantics<parallel>], iteration_bounds = array<i64: 2>, scalar_prefetch = 0 : i64, scratch_operands = 0 : i64, tpu.core_type = #tpu.core_type<tc>, window_params = [{transform_indices = @transform_0, window_bounds = array<i64: 1, 32, 256>}, {pipeline_mode = #tpu.pipeline_mode<synchronous>, transform_indices = @transform_1, window_bounds = array<i64: 32, 4>}, {pipeline_mode = #tpu.pipeline_mode<synchronous>, transform_indices = @transform_2, window_bounds = array<i64: 1, 4>}, {pipeline_mode = #tpu.pipeline_mode<synchronous>, transform_indices = @transform_3, window_bounds = array<i64: 4, 32>}, {pipeline_mode = #tpu.pipeline_mode<synchronous>, transform_indices = @transform_4, window_bounds = array<i64: 1, 32>}, {transform_indices = @transform_5, window_bounds = array<i64: 1, 32, 256>}]} {
    %c0 = arith.constant 0 : index
    %c0_0 = arith.constant 0 : index
    %c0_1 = arith.constant 0 : index
    %0 = vector.load %arg1[%c0, %c0_0, %c0_1] : memref<1x32x256xf32, #tpu.memory_space<vmem>>, vector<1x32x256xf32>
    %cst = arith.constant dense<0.000000e+00> : vector<1x32xf32>
    %1 = vector.multi_reduction <add>, %0, %cst [2] : vector<1x32x256xf32> to vector<1x32xf32>
    %cst_2 = arith.constant 3.906250e-03 : f32
    %2 = vector.broadcast %cst_2 : f32 to vector<1x32xf32>
    %3 = arith.mulf %1, %2 : vector<1x32xf32>
    %c0_3 = arith.constant 0 : index
    %c0_4 = arith.constant 0 : index
    %4 = vector.load %arg2[%c0_3, %c0_4] : memref<32x4xf32, #tpu.memory_space<vmem>>, vector<32x4xf32>
    %cst_5 = arith.constant dense<0.000000e+00> : vector<1x4xf32>
    %5 = tpu.matmul %3, %4, %cst_5 {dimension_numbers = #tpu.dot_dimension_numbers<[1], [0], [0], [1], [0, 0, 1, 1], [], []>} : vector<1x32xf32>, vector<32x4xf32>, vector<1x4xf32> -> vector<1x4xf32>
    %c0_6 = arith.constant 0 : index
    %c0_7 = arith.constant 0 : index
    %6 = vector.load %arg3[%c0_6, %c0_7] : memref<1x4xf32, #tpu.memory_space<vmem>>, vector<1x4xf32>
    %7 = arith.addf %5, %6 : vector<1x4xf32>
    %cst_8 = arith.constant 0.000000e+00 : f32
    %8 = vector.broadcast %cst_8 : f32 to vector<1x4xf32>
    %9 = arith.subf %8, %7 : vector<1x4xf32>
    %10 = math.exp %9 : vector<1x4xf32>
    %cst_9 = arith.constant 1.000000e+00 : f32
    %11 = vector.broadcast %cst_9 : f32 to vector<1x4xf32>
    %12 = arith.addf %11, %10 : vector<1x4xf32>
    %cst_10 = arith.constant 1.000000e+00 : f32
    %13 = vector.broadcast %cst_10 : f32 to vector<1x4xf32>
    %14 = arith.divf %13, %12 : vector<1x4xf32>
    %15 = arith.mulf %7, %14 : vector<1x4xf32>
    %c0_11 = arith.constant 0 : index
    %c0_12 = arith.constant 0 : index
    %16 = vector.load %arg4[%c0_11, %c0_12] : memref<4x32xf32, #tpu.memory_space<vmem>>, vector<4x32xf32>
    %cst_13 = arith.constant dense<0.000000e+00> : vector<1x32xf32>
    %17 = tpu.matmul %15, %16, %cst_13 {dimension_numbers = #tpu.dot_dimension_numbers<[1], [0], [0], [1], [0, 0, 1, 1], [], []>} : vector<1x4xf32>, vector<4x32xf32>, vector<1x32xf32> -> vector<1x32xf32>
    %c0_14 = arith.constant 0 : index
    %c0_15 = arith.constant 0 : index
    %18 = vector.load %arg5[%c0_14, %c0_15] : memref<1x32xf32, #tpu.memory_space<vmem>>, vector<1x32xf32>
    %19 = arith.addf %17, %18 : vector<1x32xf32>
    %cst_16 = arith.constant 0.000000e+00 : f32
    %20 = vector.broadcast %cst_16 : f32 to vector<1x32xf32>
    %21 = arith.subf %20, %19 : vector<1x32xf32>
    %22 = math.exp %21 : vector<1x32xf32>
    %cst_17 = arith.constant 1.000000e+00 : f32
    %23 = vector.broadcast %cst_17 : f32 to vector<1x32xf32>
    %24 = arith.addf %23, %22 : vector<1x32xf32>
    %cst_18 = arith.constant 1.000000e+00 : f32
    %25 = vector.broadcast %cst_18 : f32 to vector<1x32xf32>
    %26 = arith.divf %25, %24 : vector<1x32xf32>
    %27 = vector.shape_cast %26 : vector<1x32xf32> to vector<1x32x1xf32>
    %c0_19 = arith.constant 0 : index
    %c0_20 = arith.constant 0 : index
    %c0_21 = arith.constant 0 : index
    %28 = vector.load %arg1[%c0_19, %c0_20, %c0_21] : memref<1x32x256xf32, #tpu.memory_space<vmem>>, vector<1x32x256xf32>
    %29 = vector.broadcast %27 : vector<1x32x1xf32> to vector<1x32x256xf32>
    %30 = arith.mulf %28, %29 : vector<1x32x256xf32>
    %c0_22 = arith.constant 0 : index
    %c0_23 = arith.constant 0 : index
    %c0_24 = arith.constant 0 : index
    %31 = vector.load %arg6[%c0_22, %c0_23, %c0_24] : memref<1x32x256xf32, #tpu.memory_space<vmem>>, vector<1x32x256xf32>
    tpu.vector_store %arg6[%c0_22, %c0_23, %c0_24], %30 {strides = array<i32>} : memref<1x32x256xf32, #tpu.memory_space<vmem>>, vector<1x32x256xf32>,
    return
  }
  func.func @transform_0(%arg0: i32) -> (i32, i32, i32) {
    %c0_i32 = arith.constant 0 : i32
    %c0_i32_0 = arith.constant 0 : i32
    %c0_i32_1 = arith.constant 0 : i32
    return %arg0, %c0_i32, %c0_i32_0 : i32, i32, i32
  }
  func.func @transform_1(%arg0: i32) -> (i32, i32) {
    %c0_i32 = arith.constant 0 : i32
    %c0_i32_0 = arith.constant 0 : i32
    %c0_i32_1 = arith.constant 0 : i32
    return %c0_i32, %c0_i32_0 : i32, i32
  }
  func.func @transform_2(%arg0: i32) -> (i32, i32) {
    %c0_i32 = arith.constant 0 : i32
    %c0_i32_0 = arith.constant 0 : i32
    %c0_i32_1 = arith.constant 0 : i32
    return %c0_i32, %c0_i32_0 : i32, i32
  }
  func.func @transform_3(%arg0: i32) -> (i32, i32) {
    %c0_i32 = arith.constant 0 : i32
    %c0_i32_0 = arith.constant 0 : i32
    %c0_i32_1 = arith.constant 0 : i32
    return %c0_i32, %c0_i32_0 : i32, i32
  }
  func.func @transform_4(%arg0: i32) -> (i32, i32) {
    %c0_i32 = arith.constant 0 : i32
    %c0_i32_0 = arith.constant 0 : i32
    %c0_i32_1 = arith.constant 0 : i32
    return %c0_i32, %c0_i32_0 : i32, i32
  }
  func.func @transform_5(%arg0: i32) -> (i32, i32, i32) {
    %c0_i32 = arith.constant 0 : i32
    %c0_i32_0 = arith.constant 0 : i32
    %c0_i32_1 = arith.constant 0 : i32
    return %arg0, %c0_i32, %c0_i32_0 : i32, i32, i32
  }
}

</mosaic_0001>

<bundles_post_ra>
// kernel: tpu_custom_call.1
= control target key start
LH: loop header
LB: loop body
LE: loop exit
PB: predicated region body
PF: predicated region fallthrough
CT: control target
= control target key end

     0   :  { %10 = vsyncpa [#allocation3], 0  ;;  %s913_s0 = inlined_call_operand.hbm [shape: f32[2,32,256], index: 0, kind: input, shape index: {}]   ;;  %s914_s1 = inlined_call_operand.vmem [shape: f32[32,4], index: 1, kind: input, shape index: {}]   ;;  %s915_s2 = inlined_call_operand.vmem [shape: f32[1,4], index: 2, kind: input, shape index: {}]   ;;  %s916_s3 = inlined_call_operand.vmem [shape: f32[4,32], index: 3, kind: input, shape index: {}]   ;;  %s917_s4 = inlined_call_operand.vmem [shape: f32[1,32], index: 4, kind: input, shape index: {}]   ;;  %s918_s5 = inlined_call_operand.hbm [shape: f32[2,32,256], index: 5, kind: output, shape index: {}]  }
   0x1   :  { %12 = vsyncpa [#allocation3 + $0x1], 0 }
   0x2   :  { %13 = vsyncpa [#allocation4], 0 }
   0x3   :  { %15 = vsyncpa [#allocation4 + $0x1], 0  ;;  %s729_s18 = smov 0   ;;  %s731_s19 = smov 0  }
   0x4   :  { %s733_s20 = smov 0   ;;  %s735_s21 = smov 0  }
   0x5 LB: > { %s750_s22 = sadd.s32 4294967295, %s693_s21   ;;  %s515_s23 = sadd.s32 4294967294, %s693_s21   ;;  %s693_s21 = sphi %s735_s21, %s928_s21   ;;  %s689_s20 = sphi %s733_s20, %s927_s20   ;;  %s685_s19 = sphi %s731_s19, %s926_s19   ;;  %s681_s18 = sphi %s729_s18, %s925_s18  }
   0x6   : > { %s754_s24 = sadd.s32 1, %s693_s21   ;;  %s28_s25 = sadd.s32 1, %s689_s20 }
   0x7   : > { %s25_s26 = ssub.s32 %s693_s21, %s754_s24  ;;  %p35_p0 = scmp.ne.s32.totalorder %s689_s20, %s685_s19 }
   0x8   : > { %p26_p1 = scmp.eq.s32.totalorder %s25_s26, 0  ;;  %p36_p2 = scmp.eq.s32.totalorder %s693_s21, 0 }
   0x9   : > { %p41_p3 = scmp.ne.s32.totalorder %s685_s19, %s681_s18  ;;  %p42_p4 = scmp.eq.s32.totalorder %s750_s22, 0 }
   0xa   : > { %s766_s27 = scalar_select %p26_p1, %s689_s20, %s28_s25  }
   0xb   : > { %p768_p5 = por %p36_p2, %p35_p0  ;;  %p772_p6 = por %p42_p4, %p41_p3 }
   0xc   : > { %p149_p7 = scmp.eq.s32.totalorder %s750_s22, 1  ;;  %p155_p8 = scmp.eq.s32.totalorder %s515_s23, 1 }
   0xd   : > { %p546_p10 = scmp.lt.s32.totalorder %s693_s21, 2  ;;  %s187_s7 = sand.u32 1, %s689_s20  }
   0xe   : > { %p779_p11 = por %p149_p7, %p35_p0  ;;  %p783_p12 = por %p155_p8, %p41_p3 }
   0xf   : > { %s532_s8 = sshll.u32 %s693_s21, 6  ;;  %s518_s9 = sshll.u32 %s187_s7, 6 }
  0x10   : > { %s196_s12 = scalar_lea.hbm %s913_s0, %s532_s8  ;;  %s191_s14 = scalar_lea.vmem [#allocation2], %s518_s9 }
  0x11   : > { %s197_s13 = sshll.u32 %s196_s12, 4  ;;  %s199_s15 = sshll.u32 %s191_s14, 4  ;;  %s198_s13 = int_to_ptr.hbm [resolvable:$true] %s197_s13  ;;  %s200_s15 = int_to_ptr.vmem [resolvable:$true] %s199_s15 }
  0x12   : > { %p794_p13 = pnand %p546_p10, %p768_p5  ;;  %p521_p0 = scmp.ge.s32.totalorder %s693_s21, 1 }
  0x13   : > { %p207_p1 = scmp.lt.s32.totalorder %s693_s21, 3  ;;  %s188_s17 = scalar_lea.sflag [#allocation3], %s187_s7 }
  0x14   : > { %s597_s23 = sshra.s32 %s198_s13, 4  ;;  %p601_p3 = pneg %p794_p13  ;;  %s598_s23 = int_to_ptr.hbm [resolvable:$true] %s597_s23 }
  0x15   : > { %s599_s25 = scalar_lea.hbm %s598_s23, 64  ;;  %s604_s28 = scalar_lea.hbm %s913_s0, 128 }
  0x16   : > { %p600_p2 = scmp.ne.s32.totalorder %s598_s23, %s599_s25  ;;  %p605_p5 = scmp.lt.s32.totalorder %s598_s23, %s913_s0 }
  0x17   : > { %p606_p8 = scmp.lt.s32.totalorder %s604_s28, %s599_s25 }
  0x18   : > { %p602_p4 = pnand %p601_p3, %p600_p2 }
  0x19   : > { %p607_p10 = por %p606_p8, %p605_p5 }
  0x1a   : > { %p603_p7 = pneg %p602_p4 }
  0x1c   : > { %p608_p9 = pnand %p607_p10, %p603_p7 }
  0x1e   : > { %611 = shalt.err (!%p608_p9)
}
  0x1f   : > { %s695_s7 = smov 256   ;;  %s696_s11 = smov 16  }
  0x20   : > { %541 = dma.hbm_to_vmem [thread:$0]  (!%p794_p13), %s198_s13, 1024, %s200_s15, %s188_s17, %s695_s7, %s695_s7, %s696_s11  }
  0x21   : > { %p208_p2 = pnand %p521_p0, %p207_p1 }
  0x22   : > { %s815_s12 = sand.u32 (!%p208_p2), 1, %s685_s19  }
  0x23   : > { %211 = sbr.rel (%p208_p2) target bundleno = 619 (0x26b), region = 40  ;;  %s522_s14 = sshll.u32 (!%p208_p2), %s815_s12, 6 }
  0x24   : > { %s214_s23 = scalar_lea.sflag (!%p208_p2), [#allocation3], %s815_s12  ;;  %s217_s25 = scalar_lea.vmem (!%p208_p2), [#allocation2], %s522_s14 }
  0x28   : > { %672 = dma.done.wait (%p772_p6), %s214_s23, 1024  }
  0x29   : > { %674 = vsyncadd (%p772_p6), %s214_s23, 4294966272  ;;  %v825_v0 = vld [vmem:[%s217_s25] sm:$0xff]  ;;  %v827_v1 = vld [vmem:[%s217_s25 + $0x8] sm:$0xff]  ;;  %v278_v16 = vlaneseq  ;;  %vm283_vm0 = vcmask 130112   ;;  %vm287_vm1 = vcmask 195712   ;;  %vm291_vm2 = vcmask 261312  }
  0x2a   : > { %v829_v2 = vld [vmem:[%s217_s25 + $0x20] sm:$0xff]  ;;  %v253_v3 = vadd.f32 %v827_v1, %v825_v0  ;;  %v833_v4 = vld [vmem:[%s217_s25 + $0x28] sm:$0xff]  ;;  %v837_v6 = vld [vmem:[%s217_s25 + $0x10] sm:$0xff]  ;;  %vm293_vm3 = vcmask 261120   ;;  %vm342_vm4 = vcmask 1043456   ;;  %vm338_vm9 = vcmask 31744  }
  0x2b   : > { %v259_v5 = vadd.f32 %v833_v4, %v829_v2  ;;  %v839_v7 = vld [vmem:[%s217_s25 + $0x18] sm:$0xff]  ;;  %v841_v8 = vld [vmem:[%s217_s25 + $0x30] sm:$0xff]  ;;  %v270_v14 = vld [vmem:[%s914_s1 + $0x8] sm:$0xff]  ;;  %v279_v19 = vand.u32 127, %v278_v16  ;;  %v387_v55 = vshrl.u32 %v278_v16, 7  ;;  %s244_s29 = scalar_lea.vmem [#allocation5], %s522_s14 }
  0x2c   : > { %254 = vadd.xlane.f32.xlu0 %v253_v3  ;;  %v843_v9 = vld [vmem:[%s217_s25 + $0x38] sm:$0xff]  ;;  %v256_v10 = vadd.f32 %v839_v7, %v837_v6  ;;  %v271_v13 = vld [vmem:[%s914_s1 + $0x10] sm:$0xff]  ;;  %v269_v15 = vld [vmem:[%s914_s1] sm:$0xff]  ;;  %s533_s13 = sshll.u32 %s750_s22, 6  ;;  %s439_s26 = sshll.u32 %s244_s29, 4  ;;  %s440_s26 = int_to_ptr.vmem [resolvable:$true] %s439_s26 }
  0x2d   : > { %260 = vadd.xlane.f32.xlu1 %v259_v5  ;;  %v262_v11 = vadd.f32 %v843_v9, %v841_v8  ;;  %v272_v12 = vld [vmem:[%s914_s1 + $0x18] sm:$0xff]  ;;  %v281_v21 = vadd.s32 4294967288, %v279_v19  ;;  %v285_v22 = vadd.s32 4294967280, %v279_v19  ;;  %v289_v25 = vadd.s32 4294967272, %v279_v19  ;;  %v273_v36 = vld [vmem:[%s915_s2] sm:$0x1]  ;;  %584 = vset.pattern.permute.xlu2 %v387_v55  ;;  %s438_s17 = scalar_lea.hbm %s918_s5, %s533_s13 }
  0x2e   : > { %308 = vmatpush.msra.mxu0 %v272_v12  ;;  %v336_v39 = vld [vmem:[%s916_s3] sm:$0xf]  ;;  %v406_v56 = vadd.s32 24, %v387_v55  ;;  %v400_v57 = vadd.s32 16, %v387_v55  ;;  %s441_s8 = sshll.u32 %s438_s17, 4  ;;  %s427_s22 = scalar_lea.sflag [#allocation4], %s815_s12  ;;  %s442_s8 = int_to_ptr.hbm [resolvable:$true] %s441_s8 }
  0x2f   : > { %525 = vmatpush.msk.msra.mxu1 %vm342_vm4, %v336_v39  ;;  %v337_v58 = vld [vmem:[%s917_s4] sm:$0x1]  ;;  %s641_s14 = sshra.s32 %s442_s8, 4  ;;  %s647_s7 = scalar_lea.hbm %s918_s5, 128  ;;  %s642_s14 = int_to_ptr.hbm [resolvable:$true] %s641_s14 }
  0x30   : > { %309 = vmatpush.msra.mxu0 %v271_v13  ;;  %587 = vset.pattern.permute.xlu1 %v406_v56  ;;  %s643_s28 = scalar_lea.hbm %s642_s14, 64  ;;  %p648_p0 = scmp.lt.s32.totalorder %s642_s14, %s918_s5 }
  0x31   : > { %586 = vset.pattern.permute.xlu0 %v400_v57  ;;  %p644_p6 = scmp.ne.s32.totalorder %s642_s14, %s643_s28  ;;  %p649_p1 = scmp.lt.s32.totalorder %s647_s7, %s643_s28 }
  0x32   : > { %310 = vmatpush.msra.mxu0 %v270_v14 }
  0x33   : > { %p645_p9 = pnand %p644_p6, %p779_p11  ;;  %p650_p3 = por %p649_p1, %p648_p0 }
  0x34   : > { %257 = vadd.xlane.f32.xlu0 %v256_v10  ;;  %311 = vmatpush.msra.mxu0 %v269_v15 }
  0x35   : > { %263 = vadd.xlane.f32.xlu1 %v262_v11  ;;  %p646_p13 = pneg %p645_p9 }
  0x37   : > { %p651_p4 = pnand %p650_p3, %p646_p13 }
  0x9f   : > { %v255_v17 = vpop.xlane.xlu0 %254 }
  0xa0   : > { %v261_v18 = vpop.xlane.xlu1 %260  ;;  %v265_v20 = vmul.f32 0.00390625, %v255_v17 }
  0xa1   : > { %v267_v23 = vmul.f32 0.00390625, %v261_v18 }
  0xa2   : > { %v280_v29 = vperm.slane %v265_v20, %v279_v19  ;;  %v394_v20 = vadd.s32 8, %v387_v55 }
  0xa3   : > { %v286_v31 = vperm.slane %v267_v23, %v285_v22 }
  0xa7   : > { %v258_v24 = vpop.xlane.xlu0 %257 }
  0xa8   : > { %v266_v26 = vmul.f32 0.00390625, %v258_v24  ;;  %v264_v27 = vpop.xlane.xlu1 %263 }
  0xa9   : > { %v268_v28 = vmul.f32 0.00390625, %v264_v27 }
  0xaa   : > { %v282_v30 = vperm.slane %v266_v26, %v281_v21 }
  0xab   : > { %v290_v32 = vperm.slane %v268_v28, %v289_v25 }
  0xac   : > { %v284_v33 = vsel %vm283_vm0, %v282_v30, %v280_v29 }
  0xad   : > { %v288_v34 = vsel %vm287_vm1, %v286_v31, %v284_v33 }
  0xae   : > { %v292_v35 = vsel %vm291_vm2, %v290_v32, %v288_v34 }
  0xaf   : > { %524 = vmatmul.msk.f32.vlgmr.msra.gmra.mxu0 %vm293_vm3, %v292_v35 }
 0x12c   : > { %v313_v37 = vpop.f32.mrf.mxu0 }
 0x12d   : > { %v314_v38 = vadd.f32 %v313_v37, %v273_v36 }
 0x12f   : > { %v316_v40 = vsub.f32 0.0, %v314_v38 }
 0x131   : > { %v317_v41 = vmul.f32 1.442695, %v316_v40 }
 0x133   : > { %589 = vpow2.f32 %v317_v41 }
 0x139   : > { %v590_v42 = vpop.eup %589 }
 0x13a   : > { %v319_v43 = vadd.f32 1.0, %v590_v42 }
 0x13c   : > { %591 = vrcp.f32 %v319_v43  ;;  %v331_v47 = vand.u32 2147483648, %v319_v43  ;;  %v329_v49 = vand.u32 2147483647, %v319_v43  ;;  %vm325_vm6 = vweird.f32 %v319_v43 }
 0x13e   : > { %v332_v51 = vor.u32 1.1754944e-38, %v331_v47  ;;  %vm330_vm8 = vcmp.eq.f32.partialorder %v329_v49, 8.507059e+37 }
 0x142   : > { %v592_v44 = vpop.eup %591 }
 0x143   : > { %v321_v45 = vmul.f32 %v592_v44, %v319_v43  ;;  %vm326_vm5 = vweird.f32 %v592_v44 }
 0x144   : > { %vm327_vm7 = vmor %vm325_vm6, %vm326_vm5 }
 0x145   : > { %v322_v46 = vsub.f32 1.0, %v321_v45 }
 0x147   : > { %v323_v48 = vmul.f32 %v592_v44, %v322_v46 }
 0x149   : > { %v324_v50 = vadd.f32 %v592_v44, %v323_v48 }
 0x14b   : > { %v328_v52 = vsel %vm327_vm7, %v592_v44, %v324_v50 }
 0x14c   : > { %v333_v53 = vsel %vm330_vm8, %v332_v51, %v328_v52 }
 0x14d   : > { %v335_v54 = vmul.f32 %v333_v53, %v314_v38 }
 0x14f   : > { %526 = vmatmul.msk.f32.vlgmr.msra.gmra.mxu1 %vm338_vm9, %v335_v54 }
 0x1cc   : > { %v363_v59 = vpop.f32.mrf.mxu1 }
 0x1cd   : > { %v364_v60 = vadd.f32 %v363_v59, %v337_v58 }
 0x1cf   : > { %v366_v61 = vsub.f32 0.0, %v364_v60 }
 0x1d1   : > { %v367_v62 = vmul.f32 1.442695, %v366_v61 }
 0x1d3   : > { %593 = vpow2.f32 %v367_v62 }
 0x1d9   : > { %v594_v63 = vpop.eup %593 }
 0x1da   : > { %v369_v3 = vadd.f32 1.0, %v594_v63 }
 0x1dc   : > { %595 = vrcp.f32 %v369_v3  ;;  %v381_v12 = vand.u32 2147483648, %v369_v3  ;;  %v379_v14 = vand.u32 2147483647, %v369_v3  ;;  %vm375_vm11 = vweird.f32 %v369_v3 }
 0x1de   : > { %v382_v16 = vor.u32 1.1754944e-38, %v381_v12  ;;  %vm380_vm13 = vcmp.eq.f32.partialorder %v379_v14, 8.507059e+37 }
 0x1e2   : > { %v596_v5 = vpop.eup %595 }
 0x1e3   : > { %v371_v10 = vmul.f32 %v596_v5, %v369_v3  ;;  %vm376_vm10 = vweird.f32 %v596_v5 }
 0x1e4   : > { %vm377_vm12 = vmor %vm375_vm11, %vm376_vm10 }
 0x1e5   : > { %v372_v11 = vsub.f32 1.0, %v371_v10 }
 0x1e7   : > { %v373_v13 = vmul.f32 %v596_v5, %v372_v11 }
 0x1e9   : > { %v374_v15 = vadd.f32 %v596_v5, %v373_v13 }
 0x1eb   : > { %v378_v17 = vsel %vm377_vm12, %v596_v5, %v374_v15 }
 0x1ec   : > { %v383_v18 = vsel %vm380_vm13, %v382_v16, %v378_v17 }
 0x1ed   : > { %v385_v19 = vperm.slane %v383_v18, 0 }
 0x1ef   : > { %408 = vperm.xlu1 %587, %v385_v19   ;;  %402 = vperm.xlu0 %586, %v385_v19  }
 0x1f0   : > { %390 = vperm.xlu2 %584, %v385_v19  }
 0x1f7   : > { %588 = vset.pattern.permute.xlu0 %v406_v56 }
 0x1f8   : > { %585 = vset.pattern.permute.xlu2 %v394_v20 }
 0x200   : > { %396 = vperm.xlu2 %585, %v385_v19  }
 0x24a   : > { %v391_v21 = vpop.permute.xlu2 %390 }
 0x24b   : > { %v410_v22 = vmul.f32 %v391_v21, %v825_v0  ;;  %v411_v23 = vmul.f32 %v391_v21, %v827_v1 }
 0x24d   : > { %418 = vst [vmem:[%s244_s29] sm:$0xff] %v410_v22 }
 0x24e   : > { %419 = vst [vmem:[%s244_s29 + $0x8] sm:$0xff] %v411_v23 }
 0x25a   : > { %v397_v24 = vpop.permute.xlu2 %396 }
 0x25b   : > { %v412_v25 = vmul.f32 %v397_v24, %v837_v6  ;;  %v413_v26 = vmul.f32 %v397_v24, %v839_v7 }
 0x25d   : > { %420 = vst [vmem:[%s244_s29 + $0x10] sm:$0xff] %v412_v25 }
 0x25e   : > { %421 = vst [vmem:[%s244_s29 + $0x18] sm:$0xff] %v413_v26 }
 0x261   : > { %v409_v0 = vpop.permute.xlu1 %408  ;;  %v403_v1 = vpop.permute.xlu0 %402 }
 0x262   : > { %v416_v27 = vmul.f32 %v409_v0, %v841_v8  ;;  %v417_v28 = vmul.f32 %v409_v0, %v843_v9  ;;  %v414_v6 = vmul.f32 %v403_v1, %v829_v2  ;;  %v415_v7 = vmul.f32 %v403_v1, %v833_v4 }
 0x264   : > { %424 = vst [vmem:[%s244_s29 + $0x30] sm:$0xff] %v416_v27 }
 0x265   : > { %425 = vst [vmem:[%s244_s29 + $0x38] sm:$0xff] %v417_v28 }
 0x266   : > { %422 = vst [vmem:[%s244_s29 + $0x20] sm:$0xff] %v414_v6 }
 0x267   : > { %423 = vst [vmem:[%s244_s29 + $0x28] sm:$0xff] %v415_v7 }
 0x268   : > { %654 = shalt.err (!%p651_p4)
}
 0x269   : > { %s697_s12 = smov 256   ;;  %s698_s25 = smov 16  }
 0x26a   : > { %536 = dma.vmem_to_hbm [thread:$0]  (%p779_p11), %s440_s26, 1024, %s442_s8, %s427_s22, %s697_s12, %s697_s12, %s698_s25  }
 0x26b PF: > { %s456_s29 = sand.u32 1, %s681_s18   ;;  %p924_p7 = scmp.ge.s32.totalorder %s693_s21, 2 }
 0x26c   : > { %s457_s13 = scalar_lea.sflag [#allocation4], %s456_s29 }
 0x26d   : > { %p543_p5 = pnand %p924_p7, %p783_p12 }
 0x26f   : > { %p544_p8 = pneg %p543_p5 }
 0x271   : > { %676 = dma.done.wait (%p544_p8), %s457_s13, 1024  }
 0x272   : > { %678 = vsyncadd (%p544_p8), %s457_s13, 4294966272  ;;  %p18_p10 = scmp.ge.s32.totalorder %s754_s24, 4   ;;  %s925_s18 = smov %s685_s19 }
 0x273   : > { %s926_s19 = smov %s689_s20  ;;  %s927_s20 = smov %s766_s27 }
 0x274   : > { %s928_s21 = smov %s754_s24  ;;  %20 = sbr.rel (!%p18_p10) target bundleno = 5 (0x5), region = 85 }
 0x279   :  { %463 = vsyncpa [#allocation3], 1 }
 0x27a   :  { %465 = vsyncpa [#allocation3 + $0x1], 1 }
 0x27b   :  { %466 = vsyncpa [#allocation4], 1 }
 0x27c   :  { %468 = vsyncpa [#allocation4 + $0x1], 1 }

</bundles_post_ra>
